<compile_context>
chip_gen: v6e
topology: v6e:2x2x1
jax: 0.10.0
libtpu: 0.0.40
codegen_flags: <defaults>
</compile_context>

<pallas_src>
import functools

import jax
import jax.numpy as jnp
from jax import lax
from jax.experimental import pallas as pl
from jax.experimental.pallas import tpu as pltpu


# ----------------------------------------------------------------------------
# helpers used inside kernels
# ----------------------------------------------------------------------------
def _layernorm(x, gamma, beta, eps=1e-5):
    # x: (M, D) f32; gamma/beta: (1, D) f32.  Stats kept in f32.
    mu = jnp.mean(x, axis=-1, keepdims=True)
    var = jnp.mean((x - mu) ** 2, axis=-1, keepdims=True)
    return (x - mu) * lax.rsqrt(var + eps) * gamma + beta


def _gelu_tanh(x):
    # tanh-form GELU: transcendental work goes to the EUP slot instead of ~10
    # VPU mul/adds of an erf polynomial.  |err| vs exact erf-GELU ~1e-3.
    c = 0.7978845608028654  # sqrt(2/pi)
    return 0.5 * x * (1.0 + jnp.tanh(c * (x + 0.044715 * x * x * x)))


# ----------------------------------------------------------------------------
# fused per-layer kernel:
#   y = x + Wout( softmax(scale * Q K^T [+ mask bias]) V ) + b_out   (pre-LN)
#   o = y + W2( GELU( W1 LN(y) + b1 ) ) + b2                         (pre-LN)
# ----------------------------------------------------------------------------
def _layer_kernel(*refs, heads, dim_head, scale, has_mask):
    if has_mask:
        (xq_ref, xkv_ref, mask_ref, ln1g_ref, ln1b_ref, wqkv_ref, wout_ref,
         bout_ref, ln2g_ref, ln2b_ref, w1_ref, b1_ref, w2_ref, b2_ref,
         o_ref, kv_ref, hacc_ref) = refs
    else:
        (xq_ref, xkv_ref, ln1g_ref, ln1b_ref, wqkv_ref, wout_ref,
         bout_ref, ln2g_ref, ln2b_ref, w1_ref, b1_ref, w2_ref, b2_ref,
         o_ref, kv_ref, hacc_ref) = refs
        mask_ref = None

    inner = heads * dim_head

    g1 = ln1g_ref[...]
    be1 = ln1b_ref[...]

    # ---- full-sequence LN + K/V projection: once per batch row, cached in a
    #      bf16 VMEM scratch that persists across the (arbitrary) q-tile axis.
    @pl.when(pl.program_id(1) == 0)
    def _():
        xnk = _layernorm(xkv_ref[0], g1, be1).astype(jnp.bfloat16)       # (N, D)
        kv_f32 = jnp.dot(xnk, wqkv_ref[:, inner:],
                         preferred_element_type=jnp.float32)             # (N, 2*inner)
        kv_ref[...] = kv_f32.astype(jnp.bfloat16)

    # ------------------- Residual(PreNorm(Attention)) -------------------
    x_q = xq_ref[0]                                                      # (tq, D) f32
    xnq = _layernorm(x_q, g1, be1).astype(jnp.bfloat16)
    # scale folded into q, materialized in bf16 once (no per-head casts).
    q = (jnp.dot(xnq, wqkv_ref[:, :inner],
                 preferred_element_type=jnp.float32) * scale).astype(jnp.bfloat16)

    if mask_ref is not None:
        # Mask convention kept from the reference path: nonzero entry == masked
        # out (additive -1e4, ~= masked_fill).  Computed ONCE per tile, int8 DMA.
        bias = jnp.where(mask_ref[0] != 0, -10000.0, 0.0).astype(jnp.float32)

    for h in range(heads):                       # static unroll; heads is small
        sl = slice(h * dim_head, (h + 1) * dim_head)
        vsl = slice(inner + h * dim_head, inner + (h + 1) * dim_head)
        qh = q[:, sl]                            # (tq, dh) bf16
        kh = kv_ref[:, sl]                       # (N, dh)  bf16 (cached)
        vh = kv_ref[:, vsl]                      # (N, dh)  bf16 (cached)
        # contract the dim_head axes directly (no materialized k.T)
        dots = lax.dot_general(qh, kh, (((1,), (1,)), ((), ())),
                               preferred_element_type=jnp.float32)       # (tq, N)
        if mask_ref is not None:
            dots = dots + bias
        dots = dots - jnp.max(dots, axis=-1, keepdims=True)
        e = jnp.exp(dots)
        p = e * pl.reciprocal(jnp.sum(e, axis=-1, keepdims=True), approx=True)
        # write each head's PV result straight into the (tq, inner) scratch slab
        # (replaces list + lane-axis concat; shortens live ranges).
        hacc_ref[:, sl] = jnp.dot(p.astype(jnp.bfloat16), vh,
                                  preferred_element_type=jnp.float32)

    # single full-width output projection from the scratch slab, K = inner
    attn_out = jnp.dot(hacc_ref[...].astype(jnp.bfloat16), wout_ref[...],
                       preferred_element_type=jnp.float32) + bout_ref[...]
    y = x_q + attn_out                           # residual add #1 (f32)

    # ------------------- Residual(PreNorm(FeedForward)) -----------------
    yn = _layernorm(y, ln2g_ref[...], ln2b_ref[...]).astype(jnp.bfloat16)
    hid = jnp.dot(yn, w1_ref[...], preferred_element_type=jnp.float32) + b1_ref[...]
    hid = _gelu_tanh(hid)
    ff = jnp.dot(hid.astype(jnp.bfloat16), w2_ref[...],
                 preferred_element_type=jnp.float32) + b2_ref[...]

    o_ref[0] = (y + ff).astype(o_ref.dtype)      # residual add #2


# ----------------------------------------------------------------------------
# wrapper for one transformer layer
# ----------------------------------------------------------------------------
def _tpu_vmem_bytes():
    try:
        return int(pltpu.get_tpu_info().vmem_capacity_bytes)
    except Exception:
        return 128 * 1024 * 1024                 # conservative v5e/v6e fallback


def _pick_tq(N, vmem_cap):
    if N <= 128:
        return N
    # 128-MiB-VMEM parts (v5e/v6e): tq=256 fills the 256-wide MXU and halves the
    # per-grid-step overhead; 64-MiB parts (v7x): stay at 128.
    if vmem_cap >= 100 * 1024 * 1024 and N % 256 == 0:
        return 256
    if N % 128 == 0:
        return 128
    return N


def _vmem_limit_bytes(N, D, tq, inner, mlp_dim, has_mask, vmem_cap):
    """Per-grid-step VMEM footprint estimate.  Only raise the scoped default
    when the real block working set needs it; never request the full physical
    capacity (leave headroom for compiler scratch / semaphores)."""
    f32, bf16, i8 = 4, 2, 1
    io = 2 * (tq * D + N * D + tq * D) * f32                 # xq, xkv, out (dbl-buffered)
    if has_mask:
        io += 2 * tq * N * i8
    weights = (D * 3 * inner + inner * D + D * mlp_dim + mlp_dim * D) * bf16  # single-buffered
    small = (6 * D + mlp_dim) * f32                          # LN params + biases
    scratch = (N * 2 * inner) * bf16 + (tq * inner) * f32    # KV cache + head slab
    fill_tmp = (N * D) * bf16 + (N * 2 * inner) * f32        # KV-fill step temporaries
    steady_tmp = (tq * inner) * (f32 + bf16) + 3 * (tq * N) * f32 \
        + (tq * mlp_dim) * (f32 + bf16) + 3 * (tq * D) * f32
    est = int((io + weights + small + scratch + max(fill_tmp, steady_tmp)) * 1.25)
    if est <= 32 * 1024 * 1024:
        return None                                          # scoped default is enough
    cap = max(32 * 1024 * 1024, vmem_cap - 16 * 1024 * 1024)
    return min(est, cap)


def transformer_layer(x, params, heads, dim_head, mask=None, tq=None):
    B, N, D = x.shape
    inner = heads * dim_head
    mlp_dim = params["w1"].shape[1]
    scale = dim_head ** -0.5
    has_mask = mask is not None

    vmem_cap = _tpu_vmem_bytes()
    if tq is None:
        tq = _pick_tq(N, vmem_cap)
    if N % tq != 0:
        tq = N                                   # fall back to a single query tile
    n_q_tiles = N // tq

    kern = functools.partial(_layer_kernel, heads=heads, dim_head=dim_head,
                             scale=scale, has_mask=has_mask)

    in_specs = [
        pl.BlockSpec((1, tq, D), lambda b, i: (b, i, 0)),    # query-row tile
        pl.BlockSpec((1, N, D), lambda b, i: (b, 0, 0)),     # full rows -> K/V (DMA'd once per b)
    ]
    inputs = [x, x]
    if has_mask:
        mask_i8 = mask if mask.dtype == jnp.int8 else (mask != 0).astype(jnp.int8)
        in_specs.append(pl.BlockSpec((1, tq, N), lambda b, i: (b, i, 0)))
        inputs.append(mask_i8)

    const_map = lambda b, i: (0, 0)
    param_list = [params["ln1_g"], params["ln1_b"], params["w_qkv"],
                  params["w_out"], params["b_out"],
                  params["ln2_g"], params["ln2_b"], params["w1"], params["b1"],
                  params["w2"], params["b2"]]
    # constant-index parameters: single-buffer (their block index never changes,
    # so double buffering only wastes VMEM -- ~14 MB of dead VMEM at ViT sizes).
    in_specs += [pl.BlockSpec(p.shape, const_map, pipeline_mode=pl.Buffered(1))
                 for p in param_list]
    inputs += param_list

    scratch_shapes = [
        pltpu.VMEM((N, 2 * inner), jnp.bfloat16),   # cached K|V projection (per batch row)
        pltpu.VMEM((tq, inner), jnp.float32),       # per-head PV slab (replaces concat)
    ]

    compiler_params = pltpu.CompilerParams(
        # batch axis "parallel" (megacore); q-tile axis must be "arbitrary" so
        # every batch row visits q-tile 0 first and the cached K/V is valid.
        dimension_semantics=("parallel", "arbitrary"),
        vmem_limit_bytes=_vmem_limit_bytes(N, D, tq, inner, mlp_dim, has_mask,
                                           vmem_cap),
    )
    # TODO(synk): on v7x with B==1, split the q-tile axis into an outer
    #             parallel axis of size 2 + inner arbitrary axis so both
    #             TensorCores stay busy (cache would then be filled 2x/row).

    return pl.pallas_call(
        kern,
        out_shape=jax.ShapeDtypeStruct((B, N, D), x.dtype),
        grid=(B, n_q_tiles),
        in_specs=in_specs,
        out_specs=pl.BlockSpec((1, tq, D), lambda b, i: (b, i, 0)),
        scratch_shapes=scratch_shapes,
        compiler_params=compiler_params,
    )(*inputs)


# ----------------------------------------------------------------------------
# Transformer wrapper (depth layers of [attn-residual, ff-residual])
# ----------------------------------------------------------------------------
def init_transformer_params(key, dim, depth, heads, dim_head, mlp_dim):
    inner = heads * dim_head
    layers = []
    for _ in range(depth):
        key, k0, k1, k2, k3, k4, k5, k6 = jax.random.split(key, 8)
        s = 0.02
        layers.append({
            # PreNorm(Attention)
            "ln1_g": jnp.ones((1, dim), jnp.float32),
            "ln1_b": jnp.zeros((1, dim), jnp.float32),
            "w_qkv": (s * jax.random.normal(k0, (dim, 3 * inner))).astype(jnp.bfloat16),
            "w_out": (s * jax.random.normal(k1, (inner, dim))).astype(jnp.bfloat16),
            "b_out": (s * jax.random.normal(k2, (1, dim))).astype(jnp.float32),
            # PreNorm(FeedForward)
            "ln2_g": jnp.ones((1, dim), jnp.float32),
            "ln2_b": jnp.zeros((1, dim), jnp.float32),
            "w1": (s * jax.random.normal(k3, (dim, mlp_dim))).astype(jnp.bfloat16),
            "b1": (s * jax.random.normal(k4, (1, mlp_dim))).astype(jnp.float32),
            "w2": (s * jax.random.normal(k5, (mlp_dim, dim))).astype(jnp.bfloat16),
            "b2": (s * jax.random.normal(k6, (1, dim))).astype(jnp.float32),
        })
    return layers


def transformer_forward(x, layer_params, heads, dim_head, mlp_dim, mask=None):
    # Each layer = one fused Pallas kernel doing Residual(PreNorm(Attention))
    # followed by Residual(PreNorm(FeedForward)) while the activations stay in
    # VMEM.  mask=None compiles a no-mask kernel variant (no mask DMA at all).
    for params in layer_params:
        x = transformer_layer(x, params, heads, dim_head, mask=mask)
    # visualization=False path: Residual passes attn through untouched (None).
    # TODO(synk): attention-rollout visualization path (attn list collection /
    #             get_attention_map_multi) not implemented.
    # TODO(synk): flash-style key-axis tiling (arbitrary reduction axis with
    #             running max/sum scratch) for very long sequences.
    return {"out": x, "attn": None, "dots": None}


if __name__ == "__main__":
    # Small, module-consistent shapes.
    B, N = 2, 8
    dim, depth, heads, dim_head, mlp_dim = 32, 2, 4, 8, 64

    key = jax.random.PRNGKey(0)
    key, kx = jax.random.split(key)
    x = jax.random.normal(kx, (B, N, dim), jnp.float32)

    params = init_transformer_params(key, dim, depth, heads, dim_head, mlp_dim)

    out = transformer_forward(x, params, heads, dim_head, mlp_dim, mask=None)
    jax.block_until_ready(out["out"])
    assert out["out"].shape == (B, N, dim)
    assert bool(jnp.all(jnp.isfinite(out["out"])))
    print("KERNEL_OK")
</pallas_src>

<mosaic_0001>
module attributes {stable_mosaic.version = 11 : i64} {
  func.func @_layer_kernel(%arg0: i32, %arg1: i32, %arg2: memref<1x8x32xf32, #tpu.memory_space<vmem>>, %arg3: memref<1x8x32xf32, #tpu.memory_space<vmem>>, %arg4: memref<1x32xf32, #tpu.memory_space<vmem>>, %arg5: memref<1x32xf32, #tpu.memory_space<vmem>>, %arg6: memref<32x96xbf16, #tpu.memory_space<vmem>>, %arg7: memref<32x32xbf16, #tpu.memory_space<vmem>>, %arg8: memref<1x32xf32, #tpu.memory_space<vmem>>, %arg9: memref<1x32xf32, #tpu.memory_space<vmem>>, %arg10: memref<1x32xf32, #tpu.memory_space<vmem>>, %arg11: memref<32x64xbf16, #tpu.memory_space<vmem>>, %arg12: memref<1x64xf32, #tpu.memory_space<vmem>>, %arg13: memref<64x32xbf16, #tpu.memory_space<vmem>>, %arg14: memref<1x32xf32, #tpu.memory_space<vmem>>, %arg15: memref<1x8x32xf32, #tpu.memory_space<vmem>>, %arg16: memref<8x64xbf16, #tpu.memory_space<vmem>>, %arg17: memref<8x32xf32, #tpu.memory_space<vmem>>) attributes {dimension_semantics = [#tpu.dimension_semantics<parallel>, #tpu.dimension_semantics<arbitrary>], iteration_bounds = array<i64: 2, 1>, scalar_prefetch = 0 : i64, scratch_operands = 2 : i64, tpu.core_type = #tpu.core_type<tc>, window_params = [{transform_indices = @transform_0, window_bounds = array<i64: 1, 8, 32>}, {transform_indices = @transform_1, window_bounds = array<i64: 1, 8, 32>}, {pipeline_mode = #tpu.pipeline_mode<synchronous>, transform_indices = @transform_2, window_bounds = array<i64: 1, 32>}, {pipeline_mode = #tpu.pipeline_mode<synchronous>, transform_indices = @transform_3, window_bounds = array<i64: 1, 32>}, {pipeline_mode = #tpu.pipeline_mode<synchronous>, transform_indices = @transform_4, window_bounds = array<i64: 32, 96>}, {pipeline_mode = #tpu.pipeline_mode<synchronous>, transform_indices = @transform_5, window_bounds = array<i64: 32, 32>}, {pipeline_mode = #tpu.pipeline_mode<synchronous>, transform_indices = @transform_6, window_bounds = array<i64: 1, 32>}, {pipeline_mode = #tpu.pipeline_mode<synchronous>, transform_indices = @transform_7, window_bounds = array<i64: 1, 32>}, {pipeline_mode = #tpu.pipeline_mode<synchronous>, transform_indices = @transform_8, window_bounds = array<i64: 1, 32>}, {pipeline_mode = #tpu.pipeline_mode<synchronous>, transform_indices = @transform_9, window_bounds = array<i64: 32, 64>}, {pipeline_mode = #tpu.pipeline_mode<synchronous>, transform_indices = @transform_10, window_bounds = array<i64: 1, 64>}, {pipeline_mode = #tpu.pipeline_mode<synchronous>, transform_indices = @transform_11, window_bounds = array<i64: 64, 32>}, {pipeline_mode = #tpu.pipeline_mode<synchronous>, transform_indices = @transform_12, window_bounds = array<i64: 1, 32>}, {transform_indices = @transform_13, window_bounds = array<i64: 1, 8, 32>}]} {
    %c0 = arith.constant 0 : index
    %c0_0 = arith.constant 0 : index
    %0 = vector.load %arg4[%c0, %c0_0] : memref<1x32xf32, #tpu.memory_space<vmem>>, vector<1x32xf32>
    %c0_1 = arith.constant 0 : index
    %c0_2 = arith.constant 0 : index
    %1 = vector.load %arg5[%c0_1, %c0_2] : memref<1x32xf32, #tpu.memory_space<vmem>>, vector<1x32xf32>
    %c0_i32 = arith.constant 0 : i32
    %2 = arith.cmpi eq, %arg1, %c0_i32 : i32
    %3 = arith.extui %2 : i1 to i32
    %c0_i32_3 = arith.constant 0 : i32
    %4 = arith.cmpi ne, %3, %c0_i32_3 : i32
    scf.if %4 {
      %c0_81 = arith.constant 0 : index
      %c0_82 = arith.constant 0 : index
      %c0_83 = arith.constant 0 : index
      %164 = vector.load %arg3[%c0_81, %c0_82, %c0_83] : memref<1x8x32xf32, #tpu.memory_space<vmem>>, vector<1x8x32xf32>
      %165 = vector.shape_cast %164 : vector<1x8x32xf32> to vector<8x32xf32>
      %cst_84 = arith.constant dense<0.000000e+00> : vector<8xf32>
      %166 = vector.multi_reduction <add>, %165, %cst_84 [1] : vector<8x32xf32> to vector<8xf32>
      %167 = vector.shape_cast %166 : vector<8xf32> to vector<8x1xf32>
      %cst_85 = arith.constant 3.200000e+01 : f32
      %168 = vector.broadcast %cst_85 : f32 to vector<8x1xf32>
      %169 = arith.divf %167, %168 : vector<8x1xf32>
      %170 = vector.broadcast %169 : vector<8x1xf32> to vector<8x32xf32>
      %171 = arith.subf %165, %170 : vector<8x32xf32>
      %172 = arith.mulf %171, %171 : vector<8x32xf32>
      %cst_86 = arith.constant dense<0.000000e+00> : vector<8xf32>
      %173 = vector.multi_reduction <add>, %172, %cst_86 [1] : vector<8x32xf32> to vector<8xf32>
      %174 = vector.shape_cast %173 : vector<8xf32> to vector<8x1xf32>
      %cst_87 = arith.constant 3.200000e+01 : f32
      %175 = vector.broadcast %cst_87 : f32 to vector<8x1xf32>
      %176 = arith.divf %174, %175 : vector<8x1xf32>
      %177 = vector.broadcast %169 : vector<8x1xf32> to vector<8x32xf32>
      %178 = arith.subf %165, %177 : vector<8x32xf32>
      %cst_88 = arith.constant 9.99999974E-6 : f32
      %179 = vector.broadcast %cst_88 : f32 to vector<8x1xf32>
      %180 = arith.addf %176, %179 : vector<8x1xf32>
      %181 = math.rsqrt %180 : vector<8x1xf32>
      %182 = vector.broadcast %181 : vector<8x1xf32> to vector<8x32xf32>
      %183 = arith.mulf %178, %182 : vector<8x32xf32>
      %184 = vector.broadcast %0 : vector<1x32xf32> to vector<8x32xf32>
      %185 = arith.mulf %183, %184 : vector<8x32xf32>
      %186 = vector.broadcast %1 : vector<1x32xf32> to vector<8x32xf32>
      %187 = arith.addf %185, %186 : vector<8x32xf32>
      %188 = arith.truncf %187 : vector<8x32xf32> to vector<8x32xbf16>
      %c0_89 = arith.constant 0 : index
      %c32_90 = arith.constant 32 : index
      %189 = vector.load %arg6[%c0_89, %c32_90] : memref<32x96xbf16, #tpu.memory_space<vmem>>, vector<32x64xbf16>
      %cst_91 = arith.constant dense<0.000000e+00> : vector<8x64xf32>
      %190 = tpu.matmul %188, %189, %cst_91 {dimension_numbers = #tpu.dot_dimension_numbers<[1], [0], [0], [1], [0, 0, 1, 1], [], []>} : vector<8x32xbf16>, vector<32x64xbf16>, vector<8x64xf32> -> vector<8x64xf32>
      %191 = arith.truncf %190 : vector<8x64xf32> to vector<8x64xbf16>
      %c0_92 = arith.constant 0 : index
      %c0_93 = arith.constant 0 : index
      %192 = vector.load %arg16[%c0_92, %c0_93] : memref<8x64xbf16, #tpu.memory_space<vmem>>, vector<8x64xbf16>
      tpu.vector_store %arg16[%c0_92, %c0_93], %191 {strides = array<i32>} : memref<8x64xbf16, #tpu.memory_space<vmem>>, vector<8x64xbf16>,
    } else {
    }
    %c0_4 = arith.constant 0 : index
    %c0_5 = arith.constant 0 : index
    %c0_6 = arith.constant 0 : index
    %5 = vector.load %arg2[%c0_4, %c0_5, %c0_6] : memref<1x8x32xf32, #tpu.memory_space<vmem>>, vector<1x8x32xf32>
    %6 = vector.shape_cast %5 : vector<1x8x32xf32> to vector<8x32xf32>
    %cst = arith.constant dense<0.000000e+00> : vector<8xf32>
    %7 = vector.multi_reduction <add>, %6, %cst [1] : vector<8x32xf32> to vector<8xf32>
    %8 = vector.shape_cast %7 : vector<8xf32> to vector<8x1xf32>
    %cst_7 = arith.constant 3.200000e+01 : f32
    %9 = vector.broadcast %cst_7 : f32 to vector<8x1xf32>
    %10 = arith.divf %8, %9 : vector<8x1xf32>
    %11 = vector.broadcast %10 : vector<8x1xf32> to vector<8x32xf32>
    %12 = arith.subf %6, %11 : vector<8x32xf32>
    %13 = arith.mulf %12, %12 : vector<8x32xf32>
    %cst_8 = arith.constant dense<0.000000e+00> : vector<8xf32>
    %14 = vector.multi_reduction <add>, %13, %cst_8 [1] : vector<8x32xf32> to vector<8xf32>
    %15 = vector.shape_cast %14 : vector<8xf32> to vector<8x1xf32>
    %cst_9 = arith.constant 3.200000e+01 : f32
    %16 = vector.broadcast %cst_9 : f32 to vector<8x1xf32>
    %17 = arith.divf %15, %16 : vector<8x1xf32>
    %18 = vector.broadcast %10 : vector<8x1xf32> to vector<8x32xf32>
    %19 = arith.subf %6, %18 : vector<8x32xf32>
    %cst_10 = arith.constant 9.99999974E-6 : f32
    %20 = vector.broadcast %cst_10 : f32 to vector<8x1xf32>
    %21 = arith.addf %17, %20 : vector<8x1xf32>
    %22 = math.rsqrt %21 : vector<8x1xf32>
    %23 = vector.broadcast %22 : vector<8x1xf32> to vector<8x32xf32>
    %24 = arith.mulf %19, %23 : vector<8x32xf32>
    %25 = vector.broadcast %0 : vector<1x32xf32> to vector<8x32xf32>
    %26 = arith.mulf %24, %25 : vector<8x32xf32>
    %27 = vector.broadcast %1 : vector<1x32xf32> to vector<8x32xf32>
    %28 = arith.addf %26, %27 : vector<8x32xf32>
    %29 = arith.truncf %28 : vector<8x32xf32> to vector<8x32xbf16>
    %c0_11 = arith.constant 0 : index
    %c0_12 = arith.constant 0 : index
    %30 = vector.load %arg6[%c0_11, %c0_12] : memref<32x96xbf16, #tpu.memory_space<vmem>>, vector<32x32xbf16>
    %cst_13 = arith.constant dense<0.000000e+00> : vector<8x32xf32>
    %31 = tpu.matmul %29, %30, %cst_13 {dimension_numbers = #tpu.dot_dimension_numbers<[1], [0], [0], [1], [0, 0, 1, 1], [], []>} : vector<8x32xbf16>, vector<32x32xbf16>, vector<8x32xf32> -> vector<8x32xf32>
    %cst_14 = arith.constant 0.353553385 : f32
    %32 = vector.broadcast %cst_14 : f32 to vector<8x32xf32>
    %33 = arith.mulf %31, %32 : vector<8x32xf32>
    %34 = arith.truncf %33 : vector<8x32xf32> to vector<8x32xbf16>
    %35 = vector.extract_strided_slice %34 {offsets = [0, 0], sizes = [8, 8], strides = [1, 1]} : vector<8x32xbf16> to vector<8x8xbf16>
    %c0_15 = arith.constant 0 : index
    %c0_16 = arith.constant 0 : index
    %36 = vector.load %arg16[%c0_15, %c0_16] : memref<8x64xbf16, #tpu.memory_space<vmem>>, vector<8x8xbf16>
    %c0_17 = arith.constant 0 : index
    %c32 = arith.constant 32 : index
    %37 = vector.load %arg16[%c0_17, %c32] : memref<8x64xbf16, #tpu.memory_space<vmem>>, vector<8x8xbf16>
    %cst_18 = arith.constant dense<0.000000e+00> : vector<8x8xf32>
    %38 = tpu.matmul %35, %36, %cst_18 {dimension_numbers = #tpu.dot_dimension_numbers<[1], [1], [0], [0], [0, 0, 1, 0], [], []>} : vector<8x8xbf16>, vector<8x8xbf16>, vector<8x8xf32> -> vector<8x8xf32>
    %cst_19 = arith.constant dense<0xFF800000> : vector<8xf32>
    %39 = vector.multi_reduction <maximumf>, %38, %cst_19 [1] : vector<8x8xf32> to vector<8xf32>
    %40 = vector.shape_cast %39 : vector<8xf32> to vector<8x1xf32>
    %41 = vector.broadcast %40 : vector<8x1xf32> to vector<8x8xf32>
    %42 = arith.subf %38, %41 : vector<8x8xf32>
    %43 = math.exp %42 : vector<8x8xf32>
    %cst_20 = arith.constant dense<0.000000e+00> : vector<8xf32>
    %44 = vector.multi_reduction <add>, %43, %cst_20 [1] : vector<8x8xf32> to vector<8xf32>
    %45 = vector.shape_cast %44 : vector<8xf32> to vector<8x1xf32>
    %46 = tpu.reciprocal %45 {approx = true} : vector<8x1xf32> -> vector<8x1xf32>
    %47 = vector.broadcast %46 : vector<8x1xf32> to vector<8x8xf32>
    %48 = arith.mulf %43, %47 : vector<8x8xf32>
    %49 = arith.truncf %48 : vector<8x8xf32> to vector<8x8xbf16>
    %cst_21 = arith.constant dense<0.000000e+00> : vector<8x8xf32>
    %50 = tpu.matmul %49, %37, %cst_21 {dimension_numbers = #tpu.dot_dimension_numbers<[1], [0], [0], [1], [0, 0, 1, 1], [], []>} : vector<8x8xbf16>, vector<8x8xbf16>, vector<8x8xf32> -> vector<8x8xf32>
    %c0_22 = arith.constant 0 : index
    %c0_23 = arith.constant 0 : index
    %51 = vector.load %arg17[%c0_22, %c0_23] : memref<8x32xf32, #tpu.memory_space<vmem>>, vector<8x8xf32>
    tpu.vector_store %arg17[%c0_22, %c0_23], %50 {strides = array<i32>} : memref<8x32xf32, #tpu.memory_space<vmem>>, vector<8x8xf32>,
    %52 = vector.extract_strided_slice %34 {offsets = [0, 8], sizes = [8, 8], strides = [1, 1]} : vector<8x32xbf16> to vector<8x8xbf16>
    %c0_24 = arith.constant 0 : index
    %c8 = arith.constant 8 : index
    %53 = vector.load %arg16[%c0_24, %c8] : memref<8x64xbf16, #tpu.memory_space<vmem>>, vector<8x8xbf16>
    %c0_25 = arith.constant 0 : index
    %c40 = arith.constant 40 : index
    %54 = vector.load %arg16[%c0_25, %c40] : memref<8x64xbf16, #tpu.memory_space<vmem>>, vector<8x8xbf16>
    %cst_26 = arith.constant dense<0.000000e+00> : vector<8x8xf32>
    %55 = tpu.matmul %52, %53, %cst_26 {dimension_numbers = #tpu.dot_dimension_numbers<[1], [1], [0], [0], [0, 0, 1, 0], [], []>} : vector<8x8xbf16>, vector<8x8xbf16>, vector<8x8xf32> -> vector<8x8xf32>
    %cst_27 = arith.constant dense<0xFF800000> : vector<8xf32>
    %56 = vector.multi_reduction <maximumf>, %55, %cst_27 [1] : vector<8x8xf32> to vector<8xf32>
    %57 = vector.shape_cast %56 : vector<8xf32> to vector<8x1xf32>
    %58 = vector.broadcast %57 : vector<8x1xf32> to vector<8x8xf32>
    %59 = arith.subf %55, %58 : vector<8x8xf32>
    %60 = math.exp %59 : vector<8x8xf32>
    %cst_28 = arith.constant dense<0.000000e+00> : vector<8xf32>
    %61 = vector.multi_reduction <add>, %60, %cst_28 [1] : vector<8x8xf32> to vector<8xf32>
    %62 = vector.shape_cast %61 : vector<8xf32> to vector<8x1xf32>
    %63 = tpu.reciprocal %62 {approx = true} : vector<8x1xf32> -> vector<8x1xf32>
    %64 = vector.broadcast %63 : vector<8x1xf32> to vector<8x8xf32>
    %65 = arith.mulf %60, %64 : vector<8x8xf32>
    %66 = arith.truncf %65 : vector<8x8xf32> to vector<8x8xbf16>
    %cst_29 = arith.constant dense<0.000000e+00> : vector<8x8xf32>
    %67 = tpu.matmul %66, %54, %cst_29 {dimension_numbers = #tpu.dot_dimension_numbers<[1], [0], [0], [1], [0, 0, 1, 1], [], []>} : vector<8x8xbf16>, vector<8x8xbf16>, vector<8x8xf32> -> vector<8x8xf32>
    %c0_30 = arith.constant 0 : index
    %c8_31 = arith.constant 8 : index
    %68 = vector.load %arg17[%c0_30, %c8_31] : memref<8x32xf32, #tpu.memory_space<vmem>>, vector<8x8xf32>
    tpu.vector_store %arg17[%c0_30, %c8_31], %67 {strides = array<i32>} : memref<8x32xf32, #tpu.memory_space<vmem>>, vector<8x8xf32>,
    %69 = vector.extract_strided_slice %34 {offsets = [0, 16], sizes = [8, 8], strides = [1, 1]} : vector<8x32xbf16> to vector<8x8xbf16>
    %c0_32 = arith.constant 0 : index
    %c16 = arith.constant 16 : index
    %70 = vector.load %arg16[%c0_32, %c16] : memref<8x64xbf16, #tpu.memory_space<vmem>>, vector<8x8xbf16>
    %c0_33 = arith.constant 0 : index
    %c48 = arith.constant 48 : index
    %71 = vector.load %arg16[%c0_33, %c48] : memref<8x64xbf16, #tpu.memory_space<vmem>>, vector<8x8xbf16>
    %cst_34 = arith.constant dense<0.000000e+00> : vector<8x8xf32>
    %72 = tpu.matmul %69, %70, %cst_34 {dimension_numbers = #tpu.dot_dimension_numbers<[1], [1], [0], [0], [0, 0, 1, 0], [], []>} : vector<8x8xbf16>, vector<8x8xbf16>, vector<8x8xf32> -> vector<8x8xf32>
    %cst_35 = arith.constant dense<0xFF800000> : vector<8xf32>
    %73 = vector.multi_reduction <maximumf>, %72, %cst_35 [1] : vector<8x8xf32> to vector<8xf32>
    %74 = vector.shape_cast %73 : vector<8xf32> to vector<8x1xf32>
    %75 = vector.broadcast %74 : vector<8x1xf32> to vector<8x8xf32>
    %76 = arith.subf %72, %75 : vector<8x8xf32>
    %77 = math.exp %76 : vector<8x8xf32>
    %cst_36 = arith.constant dense<0.000000e+00> : vector<8xf32>
    %78 = vector.multi_reduction <add>, %77, %cst_36 [1] : vector<8x8xf32> to vector<8xf32>
    %79 = vector.shape_cast %78 : vector<8xf32> to vector<8x1xf32>
    %80 = tpu.reciprocal %79 {approx = true} : vector<8x1xf32> -> vector<8x1xf32>
    %81 = vector.broadcast %80 : vector<8x1xf32> to vector<8x8xf32>
    %82 = arith.mulf %77, %81 : vector<8x8xf32>
    %83 = arith.truncf %82 : vector<8x8xf32> to vector<8x8xbf16>
    %cst_37 = arith.constant dense<0.000000e+00> : vector<8x8xf32>
    %84 = tpu.matmul %83, %71, %cst_37 {dimension_numbers = #tpu.dot_dimension_numbers<[1], [0], [0], [1], [0, 0, 1, 1], [], []>} : vector<8x8xbf16>, vector<8x8xbf16>, vector<8x8xf32> -> vector<8x8xf32>
    %c0_38 = arith.constant 0 : index
    %c16_39 = arith.constant 16 : index
    %85 = vector.load %arg17[%c0_38, %c16_39] : memref<8x32xf32, #tpu.memory_space<vmem>>, vector<8x8xf32>
    tpu.vector_store %arg17[%c0_38, %c16_39], %84 {strides = array<i32>} : memref<8x32xf32, #tpu.memory_space<vmem>>, vector<8x8xf32>,
    %86 = vector.extract_strided_slice %34 {offsets = [0, 24], sizes = [8, 8], strides = [1, 1]} : vector<8x32xbf16> to vector<8x8xbf16>
    %c0_40 = arith.constant 0 : index
    %c24 = arith.constant 24 : index
    %87 = vector.load %arg16[%c0_40, %c24] : memref<8x64xbf16, #tpu.memory_space<vmem>>, vector<8x8xbf16>
    %c0_41 = arith.constant 0 : index
    %c56 = arith.constant 56 : index
    %88 = vector.load %arg16[%c0_41, %c56] : memref<8x64xbf16, #tpu.memory_space<vmem>>, vector<8x8xbf16>
    %cst_42 = arith.constant dense<0.000000e+00> : vector<8x8xf32>
    %89 = tpu.matmul %86, %87, %cst_42 {dimension_numbers = #tpu.dot_dimension_numbers<[1], [1], [0], [0], [0, 0, 1, 0], [], []>} : vector<8x8xbf16>, vector<8x8xbf16>, vector<8x8xf32> -> vector<8x8xf32>
    %cst_43 = arith.constant dense<0xFF800000> : vector<8xf32>
    %90 = vector.multi_reduction <maximumf>, %89, %cst_43 [1] : vector<8x8xf32> to vector<8xf32>
    %91 = vector.shape_cast %90 : vector<8xf32> to vector<8x1xf32>
    %92 = vector.broadcast %91 : vector<8x1xf32> to vector<8x8xf32>
    %93 = arith.subf %89, %92 : vector<8x8xf32>
    %94 = math.exp %93 : vector<8x8xf32>
    %cst_44 = arith.constant dense<0.000000e+00> : vector<8xf32>
    %95 = vector.multi_reduction <add>, %94, %cst_44 [1] : vector<8x8xf32> to vector<8xf32>
    %96 = vector.shape_cast %95 : vector<8xf32> to vector<8x1xf32>
    %97 = tpu.reciprocal %96 {approx = true} : vector<8x1xf32> -> vector<8x1xf32>
    %98 = vector.broadcast %97 : vector<8x1xf32> to vector<8x8xf32>
    %99 = arith.mulf %94, %98 : vector<8x8xf32>
    %100 = arith.truncf %99 : vector<8x8xf32> to vector<8x8xbf16>
    %cst_45 = arith.constant dense<0.000000e+00> : vector<8x8xf32>
    %101 = tpu.matmul %100, %88, %cst_45 {dimension_numbers = #tpu.dot_dimension_numbers<[1], [0], [0], [1], [0, 0, 1, 1], [], []>} : vector<8x8xbf16>, vector<8x8xbf16>, vector<8x8xf32> -> vector<8x8xf32>
    %c0_46 = arith.constant 0 : index
    %c24_47 = arith.constant 24 : index
    %102 = vector.load %arg17[%c0_46, %c24_47] : memref<8x32xf32, #tpu.memory_space<vmem>>, vector<8x8xf32>
    tpu.vector_store %arg17[%c0_46, %c24_47], %101 {strides = array<i32>} : memref<8x32xf32, #tpu.memory_space<vmem>>, vector<8x8xf32>,
    %c0_48 = arith.constant 0 : index
    %c0_49 = arith.constant 0 : index
    %103 = vector.load %arg17[%c0_48, %c0_49] : memref<8x32xf32, #tpu.memory_space<vmem>>, vector<8x32xf32>
    %104 = arith.truncf %103 : vector<8x32xf32> to vector<8x32xbf16>
    %c0_50 = arith.constant 0 : index
    %c0_51 = arith.constant 0 : index
    %105 = vector.load %arg7[%c0_50, %c0_51] : memref<32x32xbf16, #tpu.memory_space<vmem>>, vector<32x32xbf16>
    %cst_52 = arith.constant dense<0.000000e+00> : vector<8x32xf32>
    %106 = tpu.matmul %104, %105, %cst_52 {dimension_numbers = #tpu.dot_dimension_numbers<[1], [0], [0], [1], [0, 0, 1, 1], [], []>} : vector<8x32xbf16>, vector<32x32xbf16>, vector<8x32xf32> -> vector<8x32xf32>
    %c0_53 = arith.constant 0 : index
    %c0_54 = arith.constant 0 : index
    %107 = vector.load %arg8[%c0_53, %c0_54] : memref<1x32xf32, #tpu.memory_space<vmem>>, vector<1x32xf32>
    %108 = vector.broadcast %107 : vector<1x32xf32> to vector<8x32xf32>
    %109 = arith.addf %106, %108 : vector<8x32xf32>
    %110 = arith.addf %6, %109 : vector<8x32xf32>
    %c0_55 = arith.constant 0 : index
    %c0_56 = arith.constant 0 : index
    %111 = vector.load %arg9[%c0_55, %c0_56] : memref<1x32xf32, #tpu.memory_space<vmem>>, vector<1x32xf32>
    %c0_57 = arith.constant 0 : index
    %c0_58 = arith.constant 0 : index
    %112 = vector.load %arg10[%c0_57, %c0_58] : memref<1x32xf32, #tpu.memory_space<vmem>>, vector<1x32xf32>
    %cst_59 = arith.constant dense<0.000000e+00> : vector<8xf32>
    %113 = vector.multi_reduction <add>, %110, %cst_59 [1] : vector<8x32xf32> to vector<8xf32>
    %114 = vector.shape_cast %113 : vector<8xf32> to vector<8x1xf32>
    %cst_60 = arith.constant 3.200000e+01 : f32
    %115 = vector.broadcast %cst_60 : f32 to vector<8x1xf32>
    %116 = arith.divf %114, %115 : vector<8x1xf32>
    %117 = vector.broadcast %116 : vector<8x1xf32> to vector<8x32xf32>
    %118 = arith.subf %110, %117 : vector<8x32xf32>
    %119 = arith.mulf %118, %118 : vector<8x32xf32>
    %cst_61 = arith.constant dense<0.000000e+00> : vector<8xf32>
    %120 = vector.multi_reduction <add>, %119, %cst_61 [1] : vector<8x32xf32> to vector<8xf32>
    %121 = vector.shape_cast %120 : vector<8xf32> to vector<8x1xf32>
    %cst_62 = arith.constant 3.200000e+01 : f32
    %122 = vector.broadcast %cst_62 : f32 to vector<8x1xf32>
    %123 = arith.divf %121, %122 : vector<8x1xf32>
    %124 = vector.broadcast %116 : vector<8x1xf32> to vector<8x32xf32>
    %125 = arith.subf %110, %124 : vector<8x32xf32>
    %cst_63 = arith.constant 9.99999974E-6 : f32
    %126 = vector.broadcast %cst_63 : f32 to vector<8x1xf32>
    %127 = arith.addf %123, %126 : vector<8x1xf32>
    %128 = math.rsqrt %127 : vector<8x1xf32>
    %129 = vector.broadcast %128 : vector<8x1xf32> to vector<8x32xf32>
    %130 = arith.mulf %125, %129 : vector<8x32xf32>
    %131 = vector.broadcast %111 : vector<1x32xf32> to vector<8x32xf32>
    %132 = arith.mulf %130, %131 : vector<8x32xf32>
    %133 = vector.broadcast %112 : vector<1x32xf32> to vector<8x32xf32>
    %134 = arith.addf %132, %133 : vector<8x32xf32>
    %135 = arith.truncf %134 : vector<8x32xf32> to vector<8x32xbf16>
    %c0_64 = arith.constant 0 : index
    %c0_65 = arith.constant 0 : index
    %136 = vector.load %arg11[%c0_64, %c0_65] : memref<32x64xbf16, #tpu.memory_space<vmem>>, vector<32x64xbf16>
    %cst_66 = arith.constant dense<0.000000e+00> : vector<8x64xf32>
    %137 = tpu.matmul %135, %136, %cst_66 {dimension_numbers = #tpu.dot_dimension_numbers<[1], [0], [0], [1], [0, 0, 1, 1], [], []>} : vector<8x32xbf16>, vector<32x64xbf16>, vector<8x64xf32> -> vector<8x64xf32>
    %c0_67 = arith.constant 0 : index
    %c0_68 = arith.constant 0 : index
    %138 = vector.load %arg12[%c0_67, %c0_68] : memref<1x64xf32, #tpu.memory_space<vmem>>, vector<1x64xf32>
    %139 = vector.broadcast %138 : vector<1x64xf32> to vector<8x64xf32>
    %140 = arith.addf %137, %139 : vector<8x64xf32>
    %cst_69 = arith.constant 5.000000e-01 : f32
    %141 = vector.broadcast %cst_69 : f32 to vector<8x64xf32>
    %142 = arith.mulf %141, %140 : vector<8x64xf32>
    %cst_70 = arith.constant 4.471500e-02 : f32
    %143 = vector.broadcast %cst_70 : f32 to vector<8x64xf32>
    %144 = arith.mulf %143, %140 : vector<8x64xf32>
    %145 = arith.mulf %144, %140 : vector<8x64xf32>
    %146 = arith.mulf %145, %140 : vector<8x64xf32>
    %147 = arith.addf %140, %146 : vector<8x64xf32>
    %cst_71 = arith.constant 0.797884583 : f32
    %148 = vector.broadcast %cst_71 : f32 to vector<8x64xf32>
    %149 = arith.mulf %148, %147 : vector<8x64xf32>
    %150 = math.tanh %149 : vector<8x64xf32>
    %cst_72 = arith.constant 1.000000e+00 : f32
    %151 = vector.broadcast %cst_72 : f32 to vector<8x64xf32>
    %152 = arith.addf %151, %150 : vector<8x64xf32>
    %153 = arith.mulf %142, %152 : vector<8x64xf32>
    %154 = arith.truncf %153 : vector<8x64xf32> to vector<8x64xbf16>
    %c0_73 = arith.constant 0 : index
    %c0_74 = arith.constant 0 : index
    %155 = vector.load %arg13[%c0_73, %c0_74] : memref<64x32xbf16, #tpu.memory_space<vmem>>, vector<64x32xbf16>
    %cst_75 = arith.constant dense<0.000000e+00> : vector<8x32xf32>
    %156 = tpu.matmul %154, %155, %cst_75 {dimension_numbers = #tpu.dot_dimension_numbers<[1], [0], [0], [1], [0, 0, 1, 1], [], []>} : vector<8x64xbf16>, vector<64x32xbf16>, vector<8x32xf32> -> vector<8x32xf32>
    %c0_76 = arith.constant 0 : index
    %c0_77 = arith.constant 0 : index
    %157 = vector.load %arg14[%c0_76, %c0_77] : memref<1x32xf32, #tpu.memory_space<vmem>>, vector<1x32xf32>
    %158 = vector.broadcast %157 : vector<1x32xf32> to vector<8x32xf32>
    %159 = arith.addf %156, %158 : vector<8x32xf32>
    %160 = arith.addf %110, %159 : vector<8x32xf32>
    %c0_78 = arith.constant 0 : index
    %c0_79 = arith.constant 0 : index
    %c0_80 = arith.constant 0 : index
    %161 = vector.load %arg15[%c0_78, %c0_79, %c0_80] : memref<1x8x32xf32, #tpu.memory_space<vmem>>, vector<1x8x32xf32>
    %162 = vector.shape_cast %161 : vector<1x8x32xf32> to vector<8x32xf32>
    %163 = vector.shape_cast %160 : vector<8x32xf32> to vector<1x8x32xf32>
    tpu.vector_store %arg15[%c0_78, %c0_79, %c0_80], %163 {strides = array<i32>} : memref<1x8x32xf32, #tpu.memory_space<vmem>>, vector<1x8x32xf32>,
    return
  }
  func.func @transform_0(%arg0: i32, %arg1: i32) -> (i32, i32, i32) {
    %c0_i32 = arith.constant 0 : i32
    %c0_i32_0 = arith.constant 0 : i32
    return %arg0, %arg1, %c0_i32 : i32, i32, i32
  }
  func.func @transform_1(%arg0: i32, %arg1: i32) -> (i32, i32, i32) {
    %c0_i32 = arith.constant 0 : i32
    %c0_i32_0 = arith.constant 0 : i32
    %c0_i32_1 = arith.constant 0 : i32
    return %arg0, %c0_i32, %c0_i32_0 : i32, i32, i32
  }
  func.func @transform_2(%arg0: i32, %arg1: i32) -> (i32, i32) {
    %c0_i32 = arith.constant 0 : i32
    %c0_i32_0 = arith.constant 0 : i32
    %c0_i32_1 = arith.constant 0 : i32
    return %c0_i32, %c0_i32_0 : i32, i32
  }
  func.func @transform_3(%arg0: i32, %arg1: i32) -> (i32, i32) {
    %c0_i32 = arith.constant 0 : i32
    %c0_i32_0 = arith.constant 0 : i32
    %c0_i32_1 = arith.constant 0 : i32
    return %c0_i32, %c0_i32_0 : i32, i32
  }
  func.func @transform_4(%arg0: i32, %arg1: i32) -> (i32, i32) {
    %c0_i32 = arith.constant 0 : i32
    %c0_i32_0 = arith.constant 0 : i32
    %c0_i32_1 = arith.constant 0 : i32
    return %c0_i32, %c0_i32_0 : i32, i32
  }
  func.func @transform_5(%arg0: i32, %arg1: i32) -> (i32, i32) {
    %c0_i32 = arith.constant 0 : i32
    %c0_i32_0 = arith.constant 0 : i32
    %c0_i32_1 = arith.constant 0 : i32
    return %c0_i32, %c0_i32_0 : i32, i32
  }
  func.func @transform_6(%arg0: i32, %arg1: i32) -> (i32, i32) {
    %c0_i32 = arith.constant 0 : i32
    %c0_i32_0 = arith.constant 0 : i32
    %c0_i32_1 = arith.constant 0 : i32
    return %c0_i32, %c0_i32_0 : i32, i32
  }
  func.func @transform_7(%arg0: i32, %arg1: i32) -> (i32, i32) {
    %c0_i32 = arith.constant 0 : i32
    %c0_i32_0 = arith.constant 0 : i32
    %c0_i32_1 = arith.constant 0 : i32
    return %c0_i32, %c0_i32_0 : i32, i32
  }
  func.func @transform_8(%arg0: i32, %arg1: i32) -> (i32, i32) {
    %c0_i32 = arith.constant 0 : i32
    %c0_i32_0 = arith.constant 0 : i32
    %c0_i32_1 = arith.constant 0 : i32
    return %c0_i32, %c0_i32_0 : i32, i32
  }
  func.func @transform_9(%arg0: i32, %arg1: i32) -> (i32, i32) {
    %c0_i32 = arith.constant 0 : i32
    %c0_i32_0 = arith.constant 0 : i32
    %c0_i32_1 = arith.constant 0 : i32
    return %c0_i32, %c0_i32_0 : i32, i32
  }
  func.func @transform_10(%arg0: i32, %arg1: i32) -> (i32, i32) {
    %c0_i32 = arith.constant 0 : i32
    %c0_i32_0 = arith.constant 0 : i32
    %c0_i32_1 = arith.constant 0 : i32
    return %c0_i32, %c0_i32_0 : i32, i32
  }
  func.func @transform_11(%arg0: i32, %arg1: i32) -> (i32, i32) {
    %c0_i32 = arith.constant 0 : i32
    %c0_i32_0 = arith.constant 0 : i32
    %c0_i32_1 = arith.constant 0 : i32
    return %c0_i32, %c0_i32_0 : i32, i32
  }
  func.func @transform_12(%arg0: i32, %arg1: i32) -> (i32, i32) {
    %c0_i32 = arith.constant 0 : i32
    %c0_i32_0 = arith.constant 0 : i32
    %c0_i32_1 = arith.constant 0 : i32
    return %c0_i32, %c0_i32_0 : i32, i32
  }
  func.func @transform_13(%arg0: i32, %arg1: i32) -> (i32, i32, i32) {
    %c0_i32 = arith.constant 0 : i32
    %c0_i32_0 = arith.constant 0 : i32
    return %arg0, %arg1, %c0_i32 : i32, i32, i32
  }
}

</mosaic_0001>

<bundles_post_ra>
// kernel: tpu_custom_call.1
= control target key start
LH: loop header
LB: loop body
LE: loop exit
PB: predicated region body
PF: predicated region fallthrough
CT: control target
= control target key end

     0   :  { %s2545_s0 = inlined_call_operand.vmem [shape: f32[2,8,32], index: 0, kind: input, shape index: {}]   ;;  %s2546_s1 = inlined_call_operand.vmem [shape: f32[2,8,32], index: 1, kind: input, shape index: {}]   ;;  %s2547_s2 = inlined_call_operand.vmem [shape: f32[1,32], index: 2, kind: input, shape index: {}]   ;;  %s2548_s3 = inlined_call_operand.vmem [shape: f32[1,32], index: 3, kind: input, shape index: {}]   ;;  %s2549_s4 = inlined_call_operand.vmem [shape: bf16[32,96], index: 4, kind: input, shape index: {}]   ;;  %s2550_s5 = inlined_call_operand.hbm [shape: bf16[32,32], index: 5, kind: input, shape index: {}]   ;;  %s2551_s6 = inlined_call_operand.vmem [shape: f32[1,32], index: 6, kind: input, shape index: {}]   ;;  %s2552_s7 = inlined_call_operand.vmem [shape: f32[1,32], index: 7, kind: input, shape index: {}]   ;;  %s2553_s8 = inlined_call_operand.hbm [shape: f32[1,32], index: 8, kind: input, shape index: {}]   ;;  %s2554_s9 = inlined_call_operand.hbm [shape: bf16[32,64], index: 9, kind: input, shape index: {}]   ;;  %s2555_s10 = inlined_call_operand.hbm [shape: f32[1,64], index: 10, kind: input, shape index: {}]   ;;  %s2556_s11 = inlined_call_operand.vmem [shape: bf16[64,32], index: 11, kind: input, shape index: {}]   ;;  %s2557_s12 = inlined_call_operand.vmem [shape: f32[1,32], index: 12, kind: input, shape index: {}]   ;;  %s2558_s13 = inlined_call_operand.hbm [shape: f32[2,8,32], index: 13, kind: output, shape index: {}]  }
   0x1   :  { %2568 = sst [smem:[#allocation23_spill]] %s2553_s8 }
   0x2   :  { %18 = vsyncpa [#allocation5], 0 }
   0x3   :  { %19 = vsyncpa [#allocation8], 0 }
   0x4   :  { %20 = vsyncpa [#allocation11], 0 }
   0x5   :  { %21 = vsyncpa [#allocation6], 0 }
   0x6   :  { %23 = vsyncpa [#allocation6 + $0x1], 0  ;;  %s2216_s25 = smov 0   ;;  %s2218_s26 = smov 0  }
   0x7   :  { %s2220_s27 = smov 0   ;;  %s2222_s28 = smov 0  }
   0x8   :  { %s2224_s29 = smov 0   ;;  %s2226_s30 = smov 0  }
   0x9 LB: > { %2569 = sst [smem:[#allocation17_spill]] %s2105_s25  ;;  %s1602_s14 = sadd.s32 4294967295, %s2125_s30   ;;  %s2125_s30 = sphi %s2226_s30, %s29_s30   ;;  %s2121_s29 = sphi %s2224_s29, %s2590_s29   ;;  %s2117_s28 = sphi %s2222_s28, %s2589_s28   ;;  %s2113_s27 = sphi %s2220_s27, %s2588_s27   ;;  %s2109_s26 = sphi %s2218_s26, %s2592_s26   ;;  %s2105_s25 = sphi %s2216_s25, %s2591_s25  }
   0xa   : > { %2570 = sst [smem:[#allocation18_spill]] %s2113_s27  ;;  %s1603_s15 = sadd.s32 4294967294, %s2125_s30  }
   0xb   : > { %2571 = sst [smem:[#allocation19_spill]] %s2121_s29  ;;  %s41_s16 = sadd.s32 1, %s2121_s29 }
   0xc   : > { %s335_s17 = sadd.s32 1, %s2113_s27  ;;  %p43_p0 = scmp.ge.s32.totalorder %s41_s16, 2 }
   0xd   : > { %p345_p1 = scmp.ne.s32.totalorder %s2113_s27, %s2109_s26  ;;  %p346_p2 = scmp.eq.s32.totalorder %s1602_s14, 1 }
   0xe   : > { %p351_p3 = scmp.ne.s32.totalorder %s2109_s26, %s2105_s25  ;;  %s2594_s16 = smov (%p43_p0, %s41_s16), 0 }
   0xf   : > { %2572 = sst [smem:[#allocation20_spill]] %s2594_s16  ;;  %p2256_p4 = por %p346_p2, %p345_p1 }
  0x10   : > { %p352_p5 = scmp.eq.s32.totalorder %s1603_s15, 1  ;;  %s330_s19 = ssub.s32 %s2121_s29, %s2594_s16 }
  0x11   : > { %s2573_s18 = scalar_select %p2256_p4, 1, 0 }
  0x12   : > { %p1604_p6 = scmp.ge.s32.totalorder %s2125_s30, 1  ;;  %p333_p7 = scmp.eq.s32.totalorder %s330_s19, 0 }
  0x13   : > { %p2263_p8 = por %p352_p5, %p351_p3  ;;  %p359_p9 = scmp.lt.s32.totalorder %s2125_s30, 3 }
  0x14   : > { %s2269_s21 = scalar_select %p333_p7, %s2113_s27, %s335_s17  }
  0x15   : > { %s2574_s20 = scalar_select %p2263_p8, 1, 0 }
  0x16   : > { %2576 = sst [smem:[#allocation22_spill]] %s2269_s21  ;;  %p2271_p10 = pnand %p1604_p6, %p359_p9 }
  0x17   : > { %2575 = sst [smem:[#allocation21_spill]] %s2574_s20  ;;  %p2275_p11 = scmp.eq.s32.totalorder %s1602_s14, 0 }
  0x18   : > { %s2577_s22 = scalar_select %p2271_p10, 1, 0 }
  0x19   : > { %s2578_s23 = scalar_select %p2275_p11, 1, 0 }
  0x1a   : > { %p1801_p12 = pneg %p2271_p10  ;;  %s2127_s24 = smov [#allocation7]  }
  0x1b   : > { %s400_s15 = sshll.u32 %s2127_s24, 4  ;;  %s2128_s17 = smov [#allocation4]   ;;  %s401_s15 = int_to_ptr.vmem [resolvable:$true] %s400_s15 }
  0x1c   : > { %p2283_p13 = pnand %p2275_p11, %p1801_p12  ;;  %s380_s16 = sshll.u32 %s2128_s17, 4  ;;  %s381_s16 = int_to_ptr.vmem [resolvable:$true] %s380_s16 }
  0x1d   : > { %s1944_s14 = scalar_lea.vmem %s401_s15, 16  ;;  %s1951_s24 = scalar_lea.vmem %s401_s15, 32 }
  0x1e   : > { %p1935_p0 = pneg %p2283_p13  ;;  %p1945_p1 = scmp.ne.s32.totalorder %s401_s15, %s1944_s14 }
  0x1f   : > { %p1952_p5 = scmp.lt.s32.totalorder %s401_s15, %s401_s15  ;;  %p1953_p6 = scmp.lt.s32.totalorder %s1951_s24, %s1944_s14 }
  0x20   : > { %p1947_p2 = pnand %p1945_p1, %p1935_p0 }
  0x21   : > { %p1954_p7 = por %p1953_p6, %p1952_p5 }
  0x22   : > { %p1948_p3 = pneg %p1947_p2 }
  0x24   : > { %p1955_p9 = pnand %p1954_p7, %p1948_p3 }
  0x26   : > { %1958 = shalt.err (!%p1955_p9)
}
  0x27   : > { %s2580_s8 = sld [smem:[#allocation23_spill]]  ;;  %s1970_s17 = scalar_lea.vmem %s381_s16, 256 }
  0x28   : > { %p1971_p12 = scmp.ne.s32.totalorder %s381_s16, %s1970_s17  ;;  %p1978_p2 = scmp.lt.s32.totalorder %s381_s16, %s381_s16 }
  0x29   : > { %p1979_p4 = scmp.lt.s32.totalorder %s1970_s17, %s1970_s17 }
  0x2a   : > { %p1973_p8 = pnand %p1971_p12, %p1935_p0 }
  0x2b   : > { %p1980_p11 = por %p1979_p4, %p1978_p2 }
  0x2c   : > { %p1974_p1 = pneg %p1973_p8 }
  0x2d   : > { %1807 = dma.hbm_to_vmem [thread:$0]  (!%p2283_p13), %s2580_s8, 16, %s401_s15, [#allocation8]  }
  0x2e   : > { %p1981_p10 = pnand %p1980_p11, %p1974_p1 }
  0x30   : > { %1984 = shalt.err (!%p1981_p10)
}
  0x31   : > { %s2129_s14 = smov 64   ;;  %s2130_s24 = smov 4  }
  0x32   : > { %1804 = dma.hbm_to_vmem [thread:$0]  (!%p2283_p13), %s2550_s5, 256, %s381_s16, [#allocation5], %s2129_s14, %s2129_s14, %s2130_s24  }
  0x33   : > { %s2131_s21 = smov [#allocation9]   ;;  %s2132_s8 = smov [#allocation10]  }
  0x34   : > { %s410_s15 = sshll.u32 %s2131_s21, 4  ;;  %s424_s20 = sshll.u32 %s2132_s8, 4  ;;  %s411_s15 = int_to_ptr.vmem [resolvable:$true] %s410_s15  ;;  %s425_s20 = int_to_ptr.vmem [resolvable:$true] %s424_s20 }
  0x35   : > { %s1996_s25 = scalar_lea.vmem %s411_s15, 256  ;;  %p2004_p11 = scmp.lt.s32.totalorder %s411_s15, %s411_s15 }
  0x36   : > { %p1997_p8 = scmp.ne.s32.totalorder %s411_s15, %s1996_s25  ;;  %p2005_p3 = scmp.lt.s32.totalorder %s1996_s25, %s1996_s25 }
  0x38   : > { %p1999_p4 = pnand %p1997_p8, %p1935_p0  ;;  %p2006_p5 = por %p2005_p3, %p2004_p11 }
  0x3a   : > { %p2000_p10 = pneg %p1999_p4 }
  0x3c   : > { %p2007_p6 = pnand %p2006_p5, %p2000_p10 }
  0x3e   : > { %2010 = shalt.err (!%p2007_p6)
}
  0x3f   : > { %1810 = dma.hbm_to_vmem [thread:$0]  (!%p2283_p13), %s2554_s9, 256, %s411_s15, [#allocation8], %s2129_s14, %s2129_s14, %s2130_s24  }
  0x40   : > { %s2022_s8 = scalar_lea.vmem %s425_s20, 16  ;;  %s2029_s17 = scalar_lea.vmem %s425_s20, 32 }
  0x41   : > { %p2023_p7 = scmp.ne.s32.totalorder %s425_s20, %s2022_s8  ;;  %p2030_p1 = scmp.lt.s32.totalorder %s425_s20, %s425_s20 }
  0x42   : > { %p2031_p2 = scmp.lt.s32.totalorder %s2029_s17, %s2022_s8 }
  0x43   : > { %p2025_p9 = pnand %p2023_p7, %p1935_p0 }
  0x44   : > { %p2032_p8 = por %p2031_p2, %p2030_p1 }
  0x45   : > { %p2026_p12 = pneg %p2025_p9 }
  0x47   : > { %p2033_p4 = pnand %p2032_p8, %p2026_p12 }
  0x49   : > { %2036 = shalt.err (!%p2033_p4)
}
  0x4a   : > { %1813 = dma.hbm_to_vmem [thread:$0]  (!%p2283_p13), %s2555_s10, 16, %s425_s20, [#allocation11]  }
  0x4b   : > { %p2581_p10 = scmp.ne.s32.totalorder %s2577_s22, 0 }
  0x4c   : > { %p2582_p11 = scmp.ne.s32.totalorder (!%p2581_p10), %s2578_s23, 0 }
  0x4d   : > { %460 = sbr.rel (%p2581_p10) target bundleno = 2557 (0x9fd), region = 72 }
  0x52   : > { %2088 = dma.done.wait (%p2582_p11), [#allocation5], 256  }
  0x53   : > { %2090 = vsyncadd (%p2582_p11), [#allocation5], 4294967040 }
  0x54   : > { %2092 = dma.done.wait (%p2582_p11), [#allocation8], 272  }
  0x55   : > { %2094 = vsyncadd (%p2582_p11), [#allocation8], 4294967024 }
  0x56   : > { %2096 = dma.done.wait (%p2582_p11), [#allocation11], 16  }
  0x57   : > { %2098 = vsyncadd (%p2582_p11), [#allocation11], 4294967280  ;;  %p522_p13 = scmp.lt.s32.totalorder %s2117_s28, 1  ;;  %vm541_vm0 = vcmask 261120   ;;  %v1893_v4 = vld [vmem:[%s2549_s4 + $0x8] sm:$0xff]   ;;  %s2133_s8 = smov 96  }
  0x58   : > { %v1894_v15 = vld [vmem:[%s2549_s4] sm:$0xff]   ;;  %v2134_v17 = vmov 0.0   ;;  %vm2135_vm1 = vmmov 0   ;;  %v1895_v33 = vld [vmem:[%s2549_s4 + $0x8] sm:$0xff]   ;;  %vm635_vm2 = vcmask 519168   ;;  %vm730_vm3 = vcmask 64512  }
  0x59   : > { %s523_s20 = scalar_select %p522_p13, %s2117_s28, 1  ;;  %1691 = vmatprep.subr.bf16.mxu1 %v2134_v17  ;;  %1695 = vmatprep.mubr.msk.bf16.mxu1 %vm2135_vm1, %v2134_v17  ;;  %v1656_v26 = vld [vmem:[%s2547_s2] ss:$0 sm:$0xff]  ;;  %vm797_vm4 = vcmask 1043456   ;;  %vm961_vm5 = vcmask 130112   ;;  %vm1081_vm6 = vcmask 195712  }
  0x5a   : > { %1707 = vmatprep.subr.bf16.mxu0 %v2134_v17  ;;  %1709 = vmatprep.mubr.msk.bf16.mxu0 %vm2135_vm1, %v2134_v17  ;;  %v1657_v28 = vld [vmem:[%s2548_s3] ss:$0 sm:$0xff]  ;;  %s2137_s23 = smov 120   ;;  %s2138_s16 = smov 104   ;;  %vm1201_vm7 = vcmask 261312   ;;  %vm1417_vm8 = vcmask 523264  }
  0x5b   : > { %s1616_s22 = sshll.u32 %s523_s20, 3  ;;  %v1896_v36 = vld [vmem:[%s2549_s4] sm:$0xff]   ;;  %s2139_s17 = smov 88  }
  0x5c   : > { %s532_s24 = scalar_lea.vmem %s2546_s1, %s1616_s22  ;;  %s528_s27 = scalar_lea.vmem %s2545_s0, %s1616_s22 }
  0x5d   : > { %v540_v0 = vld [vmem:[%s532_s24] sm:$0xff]  ;;  %s2140_s25 = smov 80   ;;  %s2141_s29 = smov 72  }
  0x5e   : > { %v2343_v1 = vld [vmem:[%s528_s27] sm:$0xff]  ;;  %v542_v2 = vsel %vm541_vm0, %v540_v0, 0.0  ;;  %s2136_s27 = smov 112   ;;  %s2143_s20 = smov 16  }
  0x5f   : > { %v639_v3 = vsel %vm541_vm0, %v2343_v1, 0.0  ;;  %543 = vadd.xlane.f32.xlu0 %v542_v2  ;;  %s2144_s22 = smov 24   ;;  %s1653_s24 = sshll.u32 %s2117_s28, 7 }
  0x60   : > { %p2583_p3 = scmp.ne.s32.totalorder %s2573_s18, 0 }
  0x63   : > { %640 = vadd.xlane.f32.xlu0 %v639_v3 }
  0x79   : > { %587 = vrot.lane.b32.xlu0 %v1893_v4, %s2133_s8 }
  0xe8   : > { %v544_v5 = vpop.xlane.xlu0 %543 }
  0xe9   : > { %v546_v6 = vmul.f32 0.03125, %v544_v5 }
  0xeb   : > { %v547_v7 = vsub.f32 %v540_v0, %v546_v6 }
  0xec   : > { %v641_v8 = vpop.xlane.xlu0 %640 }
  0xed   : > { %v643_v9 = vmul.f32 0.03125, %v641_v8  ;;  %v548_v10 = vmul.f32 %v547_v7, %v547_v7 }
  0xef   : > { %v644_v11 = vsub.f32 %v2343_v1, %v643_v9  ;;  %v549_v12 = vsel %vm541_vm0, %v548_v10, 0.0 }
  0xf0   : > { %550 = vadd.xlane.f32.xlu1 %v549_v12  ;;  %v588_v16 = vpop.permute.xlu0 %587 }
  0xf1   : > { %v645_v13 = vmul.f32 %v644_v11, %v644_v11  ;;  %1692 = vmatpush3.bf16.msra.mxu1 %v588_v16 }
  0xf2   : > { %1693 = vmatprep.subr.bf16.mxu1 %v2134_v17 }
  0xf3   : > { %v646_v14 = vsel %vm541_vm0, %v645_v13, 0.0 }
  0xf4   : > { %647 = vadd.xlane.f32.xlu1 %v646_v14 }
 0x105   : > { %585 = vrot.lane.b32.xlu1 %v1894_v15, %s2133_s8 }
 0x179   : > { %v551_v18 = vpop.xlane.xlu1 %550 }
 0x17a   : > { %v552_v19 = vmul.f32 0.03125, %v551_v18 }
 0x17c   : > { %v553_v20 = vadd.f32 1e-05, %v552_v19 }
 0x17d   : > { %v648_v21 = vpop.xlane.xlu1 %647 }
 0x17e   : > { %1909 = vrsqrt.f32 %v553_v20  ;;  %v649_v22 = vmul.f32 0.03125, %v648_v21 }
 0x180   : > { %v650_v23 = vadd.f32 1e-05, %v649_v22 }
 0x181   : > { %v586_v24 = vpop.permute.xlu1 %585 }
 0x182   : > { %1911 = vrsqrt.f32 %v650_v23  ;;  %1694 = vmatpush3.bf16.msra.mxu1 %v586_v24 }
 0x183   : > { %1699 = vmatprep.subr.bf16.mxu1 %v2134_v17 }
 0x18b   : > { %v1910_v25 = vpop.eup %1909 }
 0x18c   : > { %v555_v27 = vmul.f32 %v1910_v25, %v547_v7 }
 0x18e   : > { %v562_v29 = vmul.f32 %v1656_v26, %v555_v27 }
 0x18f   : > { %v1912_v30 = vpop.eup %1911 }
 0x190   : > { %v569_v31 = vadd.f32 %v1657_v28, %v562_v29  ;;  %v652_v32 = vmul.f32 %v1912_v30, %v644_v11 }
 0x192   : > { %v570_v34 = vpack.c.bf16 %v569_v31, %v569_v31  ;;  %v659_v35 = vmul.f32 %v1656_v26, %v652_v32 }
 0x194   : > { %1696 = vmatmul.mubr.msk.bf16.vlgmr.msra.gmra.mxu1 %vm541_vm0, %v570_v34  ;;  %v666_v37 = vadd.f32 %v1657_v28, %v659_v35 }
 0x195   : > { %1700 = vmatpush3.bf16.msra.mxu1 %v1895_v33  ;;  %1703 = vmatprep.mubr.msk.bf16.mxu1 %vm2135_vm1, %v2134_v17 }
 0x196   : > { %1701 = vmatprep.subr.bf16.mxu1 %v2134_v17  ;;  %v667_v38 = vpack.c.bf16 %v666_v37, %v666_v37 }
 0x199   : > { %1702 = vmatpush3.bf16.msra.mxu1 %v1896_v36 }
 0x19a   : > { %1713 = vmatprep.subr.bf16.mxu1 %v2134_v17 }
 0x19c   : > { %1704 = vmatmul.mubr.msk.bf16.vlgmr.msra.gmra.mxu1 %vm541_vm0, %v667_v38 }
 0x19d   : > { %1715 = vmatprep.mubr.msk.bf16.mxu1 %vm2135_vm1, %v2134_v17 }
 0x254   : > { %v628_v39 = vpop.f32.mrf.mxu1 }
 0x255   : > { %v634_v40 = vpack.c.bf16 %v628_v39, %v628_v39 }
 0x256   : > { %v1697_v41 = vpop.f32.mrf.mxu1 }
 0x257   : > { %636 = vst.msk [vmem:[#allocation2] sm:$0xf] %vm635_vm2, %v634_v40 }
 0x258   : > { %v631_v42 = vpop.f32.mrf.mxu1 }
 0x25a   : > { %v1698_v43 = vpop.f32.mrf.mxu1 }
 0x25c   : > { %v721_v44 = vpop.f32.mrf.mxu1 }
 0x25d   : > { %v727_v45 = vmul.f32 0.35355338, %v721_v44 }
 0x25e   : > { %v1705_v46 = vpop.f32.mrf.mxu1  ;;  %v2387_v47 = vld [vmem:[#allocation2] sm:$0xf] }
 0x25f   : > { %v2389_v48 = vld [vmem:[#allocation2] ss:$0 sps:$4 sm:$0xff]   ;;  %v735_v49 = vsel %vm730_vm3, %v2387_v47, 0  ;;  %v728_v54 = vpack.c.bf16 %v727_v45, %v727_v45  ;;  %v1625_v37 = vcombine.low %v2387_v47, %v2387_v47 }
 0x260   : > { %v2393_v50 = vld [vmem:[#allocation2] ss:$0 sps:$4 sm:$0xff]   ;;  %v724_v51 = vpop.f32.mrf.mxu1  ;;  %1708 = vmatpush3.bf16.xpose.msra.mxu0 %v735_v49  ;;  %969 = vrot.lane.b32.xlu0 %v2389_v48, %s2136_s27 }
 0x261   : > { %849 = vrot.lane.b32.xlu1 %v2393_v50, %s2137_s23  ;;  %1719 = vmatprep.subr.bf16.mxu0 %v2134_v17  ;;  %v2398_v53 = vld [vmem:[#allocation2] ss:$0 sps:$4 sm:$0xff]  }
 0x262   : > { %v1706_v52 = vpop.f32.mrf.mxu1 }
 0x264   : > { %1089 = vrot.lane.b32.xlu0 %v2398_v53, %s2138_s16 }
 0x265   : > { %844 = vrot.lane.b32.xlu1 %v728_v54, %s2137_s23 }
 0x267   : > { %1710 = vmatmul.mubr.msk.bf16.vlgmr.msra.gmra.mxu0 %vm730_vm3, %v728_v54 }
 0x268   : > { %1721 = vmatprep.mubr.msk.bf16.mxu0 %vm2135_vm1, %v2134_v17 }
 0x269   : > { %964 = vrot.lane.b32.xlu1 %v728_v54, %s2136_s27 }
 0x26d   : > { %1084 = vrot.lane.b32.xlu1 %v728_v54, %s2138_s16  ;;  %s2498_s16 = scalar_lea.hbm %s2558_s13, %s1653_s24 }
 0x2d2   : > { %v970_v57 = vpop.permute.xlu0 %969 }
 0x2d3   : > { %v850_v55 = vpop.permute.xlu1 %849  ;;  %v975_v59 = vsel %vm730_vm3, %v970_v57, 0 }
 0x2d4   : > { %v855_v56 = vsel %vm730_vm3, %v850_v55, 0 }
 0x2d5   : > { %1720 = vmatpush3.bf16.xpose.msra.mxu0 %v855_v56 }
 0x2d6   : > { %1731 = vmatprep.subr.bf16.mxu0 %v2134_v17  ;;  %v1090_v60 = vpop.permute.xlu0 %1089 }
 0x2d7   : > { %v845_v58 = vpop.permute.xlu1 %844  ;;  %v1095_v62 = vsel %vm730_vm3, %v1090_v60, 0 }
 0x2db   : > { %v965_v61 = vpop.permute.xlu1 %964 }
 0x2dc   : > { %1722 = vmatmul.mubr.msk.bf16.vlgmr.msra.gmra.mxu0 %vm730_vm3, %v845_v58 }
 0x2dd   : > { %1732 = vmatpush3.bf16.xpose.msra.mxu0 %v975_v59  ;;  %1733 = vmatprep.mubr.msk.bf16.mxu0 %vm2135_vm1, %v2134_v17 }
 0x2de   : > { %1743 = vmatprep.subr.bf16.mxu0 %v2134_v17 }
 0x2df   : > { %v1085_v63 = vpop.permute.xlu1 %1084 }
 0x2e4   : > { %1734 = vmatmul.mubr.msk.bf16.vlgmr.msra.gmra.mxu0 %vm730_vm3, %v965_v61 }
 0x2e5   : > { %1744 = vmatpush3.bf16.xpose.msra.mxu0 %v1095_v62  ;;  %1745 = vmatprep.mubr.msk.bf16.mxu0 %vm2135_vm1, %v2134_v17 }
 0x2e6   : > { %1755 = vmatprep.subr.bf16.mxu0 %v2134_v17 }
 0x2ec   : > { %1746 = vmatmul.mubr.msk.bf16.vlgmr.msra.gmra.mxu0 %vm730_vm3, %v1085_v63 }
 0x2ed   : > { %1759 = vmatprep.mubr.msk.bf16.mxu0 %vm2135_vm1, %v2134_v17 }
 0x327   : > { %v771_v0 = vpop.f32.mrf.mxu0 }
 0x328   : > { %v777_v2 = vsel %vm730_vm3, %v771_v0, -inf }
 0x329   : > { %778 = vmax.xlane.f32.xlu0 %v777_v2  ;;  %v1711_v3 = vpop.f32.mrf.mxu0 }
 0x32b   : > { %v774_v4 = vpop.f32.mrf.mxu0 }
 0x32d   : > { %v1712_v5 = vpop.f32.mrf.mxu0 }
 0x39c   : > { %v891_v6 = vpop.f32.mrf.mxu0 }
 0x39d   : > { %v897_v7 = vsel %vm730_vm3, %v891_v6, -inf }
 0x39e   : > { %898 = vmax.xlane.f32.xlu1 %v897_v7  ;;  %v1723_v8 = vpop.f32.mrf.mxu0 }
 0x3a0   : > { %v894_v9 = vpop.f32.mrf.mxu0 }
 0x3a2   : > { %v1724_v10 = vpop.f32.mrf.mxu0 }
 0x3a4   : > { %v1011_v11 = vpop.f32.mrf.mxu0 }
 0x3a5   : > { %v1017_v12 = vsel %vm730_vm3, %v1011_v11, -inf }
 0x3a6   : > { %1018 = vmax.xlane.f32.xlu0 %v1017_v12  ;;  %v1735_v13 = vpop.f32.mrf.mxu0 }
 0x3a8   : > { %v1014_v14 = vpop.f32.mrf.mxu0 }
 0x3aa   : > { %v1736_v15 = vpop.f32.mrf.mxu0 }
 0x3ac   : > { %v1131_v16 = vpop.f32.mrf.mxu0 }
 0x3ad   : > { %v1137_v18 = vsel %vm730_vm3, %v1131_v16, -inf }
 0x3ae   : > { %1138 = vmax.xlane.f32.xlu0 %v1137_v18  ;;  %v1747_v19 = vpop.f32.mrf.mxu0  ;;  %v1902_v18 = vld [vmem:[#allocation4] sm:$0xff]  }
 0x3b0   : > { %v1134_v20 = vpop.f32.mrf.mxu0 }
 0x3b2   : > { %v779_v21 = vpop.xlane.xlu0 %778  ;;  %v1748_v22 = vpop.f32.mrf.mxu0 }
 0x3b3   : > { %v780_v23 = vsub.f32 %v771_v0, %v779_v21 }
 0x3b5   : > { %v781_v24 = vmul.f32 1.442695, %v780_v23 }
 0x3b7   : > { %1913 = vpow2.f32 %v781_v24 }
 0x3c4   : > { %v1914_v25 = vpop.eup %1913 }
 0x3c5   : > { %v783_v26 = vsel %vm730_vm3, %v1914_v25, 0.0 }
 0x3c6   : > { %784 = vadd.xlane.f32.xlu0 %v783_v26 }
 0x427   : > { %v899_v27 = vpop.xlane.xlu1 %898 }
 0x428   : > { %v900_v28 = vsub.f32 %v891_v6, %v899_v27 }
 0x42a   : > { %v901_v29 = vmul.f32 1.442695, %v900_v28  ;;  %v1636_v28 = vld [vmem:[%s2551_s6] ss:$0 sm:$0xff] }
 0x42c   : > { %1915 = vpow2.f32 %v901_v29 }
 0x42f   : > { %v1019_v30 = vpop.xlane.xlu0 %1018 }
 0x430   : > { %v1020_v31 = vsub.f32 %v1011_v11, %v1019_v30 }
 0x432   : > { %v1021_v32 = vmul.f32 1.442695, %v1020_v31 }
 0x434   : > { %1917 = vpow2.f32 %v1021_v32 }
 0x437   : > { %v1139_v38 = vpop.xlane.xlu0 %1138 }
 0x438   : > { %v1140_v39 = vsub.f32 %v1131_v16, %v1139_v38  ;;  %v1901_v16 = vld [vmem:[#allocation4 + $0x8] sm:$0xff]  }
 0x439   : > { %v1916_v33 = vpop.eup %1915  ;;  %1756 = vmatpush3.bf16.msra.mxu0 %v1901_v16 }
 0x43a   : > { %v903_v34 = vsel %vm730_vm3, %v1916_v33, 0.0  ;;  %v1141_v40 = vmul.f32 1.442695, %v1140_v39  ;;  %1757 = vmatprep.subr.bf16.mxu0 %v2134_v17 }
 0x43b   : > { %904 = vadd.xlane.f32.xlu1 %v903_v34 }
 0x43c   : > { %1919 = vpow2.f32 %v1141_v40 }
 0x43d   : > { %1758 = vmatpush3.bf16.msra.mxu0 %v1902_v18 }
 0x43e   : > { %1771 = vmatprep.subr.bf16.mxu0 %v2134_v17 }
 0x441   : > { %v1918_v35 = vpop.eup %1917 }
 0x442   : > { %v1023_v36 = vsel %vm730_vm3, %v1918_v35, 0.0 }
 0x443   : > { %1024 = vadd.xlane.f32.xlu0 %v1023_v36 }
 0x449   : > { %v1920_v41 = vpop.eup %1919 }
 0x44a   : > { %v1143_v42 = vsel %vm730_vm3, %v1920_v41, 0.0 }
 0x44c   : > { %909 = vrot.lane.b32.xlu1 %v2393_v50, %s2139_s17 }
 0x44f   : > { %v785_v43 = vpop.xlane.xlu0 %784 }
 0x450   : > { %1029 = vrot.lane.b32.xlu1 %v2389_v48, %s2140_s25  ;;  %1921 = vrcp.f32 %v785_v43  ;;  %s2145_s25 = smov [#allocation12]  }
 0x459   : > { %792 = vrot.lane.b32.xlu0 %v1625_v37, %s2133_s8  ;;  %s2142_s8 = smov 8  }
 0x45d   : > { %v1922_v45 = vpop.eup %1921 }
 0x45e   : > { %v787_v47 = vmul.f32 %v1922_v45, %v1914_v25 }
 0x460   : > { %v788_v51 = vpack.c.bf16 %v787_v47, %v787_v47 }
 0x474   : > { %1144 = vadd.xlane.f32.xlu1 %v1143_v42  ;;  %v1904_v42 = vld [vmem:[#allocation9] sm:$0xff]  }
 0x485   : > { %1149 = vrot.lane.b32.xlu1 %v2398_v53, %s2141_s29  ;;  %s2041_s29 = sshll.u32 %s2145_s25, 4  ;;  %s2042_s29 = int_to_ptr.vmem [resolvable:$false] %s2041_s29 }
 0x4c4   : > { %v905_v44 = vpop.xlane.xlu1 %904 }
 0x4c5   : > { %1923 = vrcp.f32 %v905_v44 }
 0x4c8   : > { %v910_v50 = vpop.permute.xlu1 %909 }
 0x4c9   : > { %v915_v53 = vsel %vm797_vm4, %v910_v50, 0 }
 0x4cc   : > { %v1025_v46 = vpop.xlane.xlu0 %1024  ;;  %v1030_v55 = vpop.permute.xlu1 %1029 }
 0x4cd   : > { %1925 = vrcp.f32 %v1025_v46  ;;  %v1035_v58 = vsel %vm797_vm4, %v1030_v55, 0  ;;  %v1640_v46 = vld [vmem:[%s2552_s7] ss:$0 sm:$0xff] }
 0x4ce   : > { %v1908_v55 = vld [vmem:[%s2556_s11] sm:$0xff]  }
 0x4d0   : > { %v793_v48 = vpop.permute.xlu0 %792 }
 0x4d1   : > { %v799_v49 = vsel %vm797_vm4, %v793_v48, 0  ;;  %v1641_v48 = vld [vmem:[#allocation7] ss:$0 sm:$0xff] }
 0x4d2   : > { %1714 = vmatpush3.bf16.msra.mxu1 %v799_v49  ;;  %v1924_v52 = vpop.eup %1923 }
 0x4d3   : > { %1725 = vmatprep.subr.bf16.mxu1 %v2134_v17  ;;  %v907_v54 = vmul.f32 %v1924_v52, %v1916_v33  ;;  %v1905_v52 = vld [vmem:[%s2556_s11 + $0x18] sm:$0xff]  }
 0x4d5   : > { %1716 = vmatmul.mubr.msk.bf16.vlgmr.msra.gmra.mxu1 %vm730_vm3, %v788_v51  ;;  %v908_v56 = vpack.c.bf16 %v907_v54, %v907_v54  ;;  %v1907_v54 = vld [vmem:[%s2556_s11 + $0x8] sm:$0xff]  }
 0x4d6   : > { %1726 = vmatpush3.bf16.msra.mxu1 %v915_v53  ;;  %1727 = vmatprep.mubr.msk.bf16.mxu1 %vm2135_vm1, %v2134_v17  ;;  %v1906_v53 = vld [vmem:[%s2556_s11 + $0x10] sm:$0xff]  }
 0x4d7   : > { %1737 = vmatprep.subr.bf16.mxu1 %v2134_v17 }
 0x4da   : > { %v1926_v57 = vpop.eup %1925 }
 0x4db   : > { %v1027_v59 = vmul.f32 %v1926_v57, %v1918_v35 }
 0x4dd   : > { %1728 = vmatmul.mubr.msk.bf16.vlgmr.msra.gmra.mxu1 %vm730_vm3, %v908_v56  ;;  %v1028_v60 = vpack.c.bf16 %v1027_v59, %v1027_v59  ;;  %v1642_v56 = vld [vmem:[#allocation10] ss:$0 sm:$0xff] }
 0x4de   : > { %1738 = vmatpush3.bf16.msra.mxu1 %v1035_v58  ;;  %1739 = vmatprep.mubr.msk.bf16.mxu1 %vm2135_vm1, %v2134_v17 }
 0x4df   : > { %1749 = vmatprep.subr.bf16.mxu1 %v2134_v17 }
 0x4e5   : > { %1740 = vmatmul.mubr.msk.bf16.vlgmr.msra.gmra.mxu1 %vm730_vm3, %v1028_v60 }
 0x4e6   : > { %1751 = vmatprep.mubr.msk.bf16.mxu1 %vm2135_vm1, %v2134_v17 }
 0x4fd   : > { %v1145_v61 = vpop.xlane.xlu1 %1144 }
 0x4fe   : > { %1927 = vrcp.f32 %v1145_v61 }
 0x501   : > { %v1150_v62 = vpop.permute.xlu1 %1149 }
 0x502   : > { %v1155_v63 = vsel %vm797_vm4, %v1150_v62, 0 }
 0x503   : > { %1750 = vmatpush3.bf16.msra.mxu1 %v1155_v63 }
 0x504   : > { %1763 = vmatprep.subr.bf16.mxu1 %v2134_v17 }
 0x50b   : > { %v1928_v0 = vpop.eup %1927 }
 0x50c   : > { %v1147_v2 = vmul.f32 %v1928_v0, %v1920_v41  ;;  %v1903_v41 = vld [vmem:[#allocation9 + $0x8] sm:$0xff]  }
 0x50e   : > { %v1148_v3 = vpack.c.bf16 %v1147_v2, %v1147_v2 }
 0x510   : > { %1752 = vmatmul.mubr.msk.bf16.vlgmr.msra.gmra.mxu1 %vm730_vm3, %v1148_v3 }
 0x511   : > { %1767 = vmatprep.mubr.msk.bf16.mxu1 %vm2135_vm1, %v2134_v17  ;;  %1764 = vmatpush3.bf16.msra.mxu1 %v1903_v41 }
 0x512   : > { %1765 = vmatprep.subr.bf16.mxu1 %v2134_v17 }
 0x515   : > { %1766 = vmatpush3.bf16.msra.mxu1 %v1904_v42 }
 0x595   : > { %v835_v4 = vpop.f32.mrf.mxu1 }
 0x596   : > { %841 = vst.msk [vmem:[#allocation3] sm:$0xff] %vm730_vm3, %v835_v4 }
 0x597   : > { %v1717_v5 = vpop.f32.mrf.mxu1 }
 0x599   : > { %v838_v6 = vpop.f32.mrf.mxu1 }
 0x59b   : > { %v1718_v7 = vpop.f32.mrf.mxu1 }
 0x59d   : > { %v951_v8 = vpop.f32.mrf.mxu1 }
 0x59e   : > { %958 = vrot.lane.b32.xlu0 %v951_v8, %s2142_s8  ;;  %v1646_v8 = vld [vmem:[%s2557_s12] ss:$0 sm:$0xff]  ;;  %s2043_s8 = scalar_lea.vmem %s2042_s29, 256 }
 0x59f   : > { %v1729_v9 = vpop.f32.mrf.mxu1 }
 0x5a1   : > { %v954_v10 = vpop.f32.mrf.mxu1 }
 0x5a3   : > { %v1730_v11 = vpop.f32.mrf.mxu1 }
 0x5a5   : > { %v1071_v12 = vpop.f32.mrf.mxu1 }
 0x5a6   : > { %1078 = vrot.lane.b32.xlu1 %v1071_v12, %s2143_s20  ;;  %s519_s20 = sand.u32 1, %s2109_s26  }
 0x5a7   : > { %v1741_v13 = vpop.f32.mrf.mxu1  ;;  %s1464_s28 = scalar_lea.sflag [#allocation6], %s519_s20 }
 0x5a9   : > { %v1074_v14 = vpop.f32.mrf.mxu1 }
 0x5ab   : > { %v1742_v15 = vpop.f32.mrf.mxu1 }
 0x5d0   : > { %v1191_v19 = vpop.f32.mrf.mxu1 }
 0x5d1   : > { %1198 = vrot.lane.b32.xlu0 %v1191_v19, %s2144_s22  ;;  %s1615_s22 = sshll.u32 %s519_s20, 3 }
 0x5d2   : > { %v1753_v20 = vpop.f32.mrf.mxu1  ;;  %s521_s21 = scalar_lea.vmem [#allocation12], %s1615_s22 }
 0x5d3   : > { %s1478_s15 = sshll.u32 %s521_s21, 4  ;;  %s2500_s15 = int_to_ptr.vmem [resolvable:$true] %s1478_s15 }
 0x5d4   : > { %v1194_v21 = vpop.f32.mrf.mxu1  ;;  %s2037_s17 = scalar_lea.vmem %s2500_s15, 128  ;;  %p2044_p7 = scmp.lt.s32.totalorder %s2500_s15, %s2042_s29 }
 0x5d5   : > { %p2038_p0 = scmp.ne.s32.totalorder %s2500_s15, %s2037_s17  ;;  %p2045_p9 = scmp.lt.s32.totalorder %s2043_s8, %s2037_s17 }
 0x5d6   : > { %v1754_v22 = vpop.f32.mrf.mxu1 }
 0x5d7   : > { %p2039_p5 = pnand %p2038_p0, %p2583_p3  ;;  %p2046_p12 = por %p2045_p9, %p2044_p7 }
 0x5d9   : > { %p2040_p6 = pneg %p2039_p5 }
 0x5db   : > { %p2047_p1 = pnand %p2046_p12, %p2040_p6 }
 0x610   : > { %v959_v23 = vpop.permute.xlu0 %958 }
 0x611   : > { %962 = vst.msk [vmem:[#allocation3] sm:$0xff] %vm961_vm5, %v959_v23 }
 0x618   : > { %v1079_v24 = vpop.permute.xlu1 %1078 }
 0x619   : > { %1082 = vst.msk [vmem:[#allocation3] sm:$0xff] %vm1081_vm6, %v1079_v24 }
 0x643   : > { %v1199_v25 = vpop.permute.xlu0 %1198 }
 0x644   : > { %1202 = vst.msk [vmem:[#allocation3] sm:$0xff] %vm1201_vm7, %v1199_v25 }
 0x64b   : > { %v1203_v26 = vld [vmem:[#allocation3] sm:$0xff] }
 0x64c   : > { %v1204_v27 = vpack.c.bf16 %v1203_v26, %v1203_v26 }
 0x64e   : > { %1760 = vmatmul.mubr.msk.bf16.vlgmr.msra.gmra.mxu0 %vm541_vm0, %v1204_v27 }
 0x64f   : > { %1779 = vmatprep.mubr.msk.bf16.mxu0 %vm2135_vm1, %v2134_v17  ;;  %1772 = vmatpush3.bf16.msra.mxu0 %v1905_v52 }
 0x650   : > { %1773 = vmatprep.subr.bf16.mxu0 %v2134_v17 }
 0x653   : > { %1774 = vmatpush3.bf16.msra.mxu0 %v1906_v53 }
 0x654   : > { %1775 = vmatprep.subr.bf16.mxu0 %v2134_v17 }
 0x657   : > { %1776 = vmatpush3.bf16.msra.mxu0 %v1907_v54 }
 0x658   : > { %1777 = vmatprep.subr.bf16.mxu0 %v2134_v17 }
 0x65b   : > { %1778 = vmatpush3.bf16.msra.mxu0 %v1908_v55 }
 0x70e   : > { %v1265_v29 = vpop.f32.mrf.mxu0 }
 0x70f   : > { %v1266_v30 = vadd.f32 %v1636_v28, %v1265_v29 }
 0x710   : > { %v1761_v31 = vpop.f32.mrf.mxu0 }
 0x711   : > { %v2463_v32 = vadd.f32 %v1266_v30, %v2343_v1 }
 0x712   : > { %v1268_v33 = vpop.f32.mrf.mxu0 }
 0x713   : > { %v1274_v34 = vsel %vm541_vm0, %v2463_v32, 0.0 }
 0x714   : > { %1275 = vadd.xlane.f32.xlu1 %v1274_v34  ;;  %v1762_v35 = vpop.f32.mrf.mxu0 }
 0x79d   : > { %v1276_v36 = vpop.xlane.xlu1 %1275 }
 0x79e   : > { %v1277_v37 = vmul.f32 0.03125, %v1276_v36 }
 0x7a0   : > { %v1278_v38 = vsub.f32 %v2463_v32, %v1277_v37 }
 0x7a2   : > { %v1279_v39 = vmul.f32 %v1278_v38, %v1278_v38 }
 0x7a4   : > { %v1280_v40 = vsel %vm541_vm0, %v1279_v39, 0.0 }
 0x7a5   : > { %1281 = vadd.xlane.f32.xlu0 %v1280_v40 }
 0x82e   : > { %v1282_v1 = vpop.xlane.xlu0 %1281 }
 0x82f   : > { %v1283_v43 = vmul.f32 0.03125, %v1282_v1 }
 0x831   : > { %v1284_v44 = vadd.f32 1e-05, %v1283_v43 }
 0x833   : > { %1929 = vrsqrt.f32 %v1284_v44 }
 0x840   : > { %v1930_v45 = vpop.eup %1929 }
 0x841   : > { %v1286_v47 = vmul.f32 %v1930_v45, %v1278_v38 }
 0x843   : > { %v1293_v49 = vmul.f32 %v1640_v46, %v1286_v47 }
 0x845   : > { %v1300_v50 = vadd.f32 %v1641_v48, %v1293_v49 }
 0x847   : > { %v1301_v51 = vpack.c.bf16 %v1300_v50, %v1300_v50 }
 0x849   : > { %1768 = vmatmul.mubr.msk.bf16.vlgmr.msra.gmra.mxu1 %vm541_vm0, %v1301_v51 }
 0x909   : > { %v1362_v57 = vpop.f32.mrf.mxu1 }
 0x90a   : > { %v1363_v58 = vadd.f32 %v1642_v56, %v1362_v57 }
 0x90b   : > { %v1769_v59 = vpop.f32.mrf.mxu1 }
 0x90c   : > { %v1369_v60 = vmul.f32 0.044715, %v1363_v58  ;;  %v1368_v5 = vmul.f32 0.5, %v1363_v58 }
 0x90d   : > { %v1365_v61 = vpop.f32.mrf.mxu1 }
 0x90e   : > { %v1370_v62 = vmul.f32 %v1369_v60, %v1363_v58 }
 0x90f   : > { %v1770_v63 = vpop.f32.mrf.mxu1 }
 0x910   : > { %v1371_v0 = vmul.f32 %v1370_v62, %v1363_v58 }
 0x912   : > { %v1372_v2 = vadd.f32 %v1371_v0, %v1363_v58 }
 0x914   : > { %v1373_v3 = vmul.f32 0.7978846, %v1372_v2 }
 0x916   : > { %1931 = vtanh.f32 %v1373_v3 }
 0x923   : > { %v1932_v4 = vpop.eup %1931 }
 0x924   : > { %v1375_v6 = vadd.f32 1.0, %v1932_v4 }
 0x926   : > { %v1376_v7 = vmul.f32 %v1375_v6, %v1368_v5 }
 0x928   : > { %v1377_v17 = vpack.c.bf16 %v1376_v7, %v1376_v7 }
 0x92a   : > { %1780 = vmatmul.mubr.msk.bf16.vlgmr.msra.gmra.mxu0 %vm1417_vm8, %v1377_v17 }
 0x9ea   : > { %v1455_v9 = vpop.f32.mrf.mxu0 }
 0x9eb   : > { %v1456_v10 = vadd.f32 %v1646_v8, %v1455_v9 }
 0x9ec   : > { %v1781_v11 = vpop.f32.mrf.mxu0 }
 0x9ed   : > { %v1461_v12 = vadd.f32 %v1456_v10, %v2463_v32 }
 0x9ee   : > { %v1458_v13 = vpop.f32.mrf.mxu0 }
 0x9ef   : > { %1462 = vst.msk [vmem:[%s521_s21] sm:$0xff] %vm541_vm0, %v1461_v12 }
 0x9f0   : > { %v1782_v14 = vpop.f32.mrf.mxu0 }
 0x9f1   : > { %2050 = shalt.err (!%p2047_p1)
}
 0x9f2   : > { %s2051_s22 = scalar_lea.hbm %s2498_s16, 128  ;;  %s2055_s14 = scalar_lea.hbm %s2558_s13, 256 }
 0x9f3   : > { %p2052_p2 = scmp.ne.s32.totalorder %s2498_s16, %s2051_s22  ;;  %p2056_p10 = scmp.lt.s32.totalorder %s2498_s16, %s2558_s13 }
 0x9f4   : > { %p2057_p11 = scmp.lt.s32.totalorder %s2055_s14, %s2051_s22 }
 0x9f5   : > { %p2053_p8 = pnand %p2052_p2, %p2583_p3 }
 0x9f6   : > { %p2058_p13 = por %p2057_p11, %p2056_p10 }
 0x9f7   : > { %p2054_p4 = pneg %p2053_p8 }
 0x9f9   : > { %p2059_p0 = pnand %p2058_p13, %p2054_p4 }
 0x9fb   : > { %2062 = shalt.err (!%p2059_p0)
}
 0x9fc   : > { %1799 = dma.vmem_to_hbm [thread:$0]  (%p2583_p3), %s2500_s15, 128, %s2498_s16, %s1464_s28  }
 0x9fd PF: > { %s2584_s27 = sld [smem:[#allocation17_spill]]  ;;  %p1826_p5 = scmp.ge.s32.totalorder %s2125_s30, 2 }
 0x9fe   : > { %s2585_s23 = sld [smem:[#allocation21_spill]] }
 0xa03   : > { %s1490_s17 = sand.u32 1, %s2584_s27  }
 0xa04   : > { %p2586_p6 = scmp.ne.s32.totalorder %s2585_s23, 0  ;;  %s1491_s25 = scalar_lea.sflag [#allocation6], %s1490_s17 }
 0xa06   : > { %p1815_p7 = pnand %p1826_p5, %p2586_p6 }
 0xa08   : > { %p1816_p9 = pneg %p1815_p7 }
 0xa0a   : > { %2100 = dma.done.wait (%p1816_p9), %s1491_s25, 128  }
 0xa0b   : > { %2102 = vsyncadd (%p1816_p9), %s1491_s25, 4294967168  ;;  %s29_s30 = sadd.s32 1, %s2125_s30   ;;  %s2587_s18 = sld [smem:[#allocation18_spill]] }
 0xa0c   : > { %p26_p12 = scmp.ge.s32.totalorder %s29_s30, 4   ;;  %s2588_s27 = sld [smem:[#allocation22_spill]] }
 0xa0d   : > { %s2589_s28 = sld [smem:[#allocation19_spill]]  ;;  %s2591_s25 = smov %s2109_s26 }
 0xa0e   : > { %s2590_s29 = sld [smem:[#allocation20_spill]]  ;;  %28 = sbr.rel (!%p26_p12) target bundleno = 9 (0x9), region = 131 }
 0xa11   : > { %s2592_s26 = smov %s2587_s18 }
 0xa13   :  { %1496 = vsyncpa [#allocation5], 1 }
 0xa14   :  { %1498 = vsyncpa [#allocation5 + $0x1], 1 }
 0xa15   :  { %1499 = vsyncpa [#allocation8], 1 }
 0xa16   :  { %1500 = vsyncpa [#allocation11], 1 }
 0xa17   :  { %1501 = vsyncpa [#allocation6], 1 }
 0xa18   :  { %1503 = vsyncpa [#allocation6 + $0x1], 1 }

</bundles_post_ra>
